<compile_context>
chip_gen: v5e
topology: v5e:2x2
jax: 0.10.0
libtpu: 0.0.40
codegen_flags: <defaults>
</compile_context>

<pallas_src>
import jax
import jax.numpy as jnp
from jax.experimental import pallas as pl
from jax.experimental.pallas import tpu as pltpu


def _critic_kernel(xT_ref, win_ref, bin_ref, wb_ref, bb_ref, wo_ref, bo_ref,
                   out_ref):
    xT = xT_ref[...]                                      # (5, TB)

    # Fused input layer + ReLU:  (256, 5) @ (5, TB) -> (256, TB)
    h = jnp.dot(win_ref[...], xT, preferred_element_type=jnp.float32)
    h = jnp.maximum(h + bin_ref[...], 0.0)

    # Body layer + ReLU:  (128, 256) @ (256, TB) -> (128, TB)
    body = jnp.dot(wb_ref[...], h, preferred_element_type=jnp.float32)
    body = jnp.maximum(body + bb_ref[...], 0.0)

    # Output layer (0.01 scale folded into wo/bo):
    # (1, 128) @ (128, TB) -> (1, TB), lane-dense store.
    out_ref[...] = (jnp.dot(wo_ref[...], body,
                            preferred_element_type=jnp.float32)
                    + bo_ref[...])


def _pick_batch_tile(B):
    # Single full block for small / moderate B (block == full dim is always
    # legal, even if not 128-aligned); otherwise a lane-aligned 2048 tile
    # (multiple of 128) — activations are tiny so VMEM is never the limit,
    # and big tiles amortize per-grid-step overhead.
    if B <= 2048:
        return B
    return 2048


def custom_critic_forward(x, params, tb=None):
    """x: (B, 5) float32.  params: PyTorch-native (out, in) weights (see init_params)."""
    B = x.shape[0]
    TB = _pick_batch_tile(B) if tb is None else tb

    # --- wrapper-side weight packing (one-time, outside the kernel) ---------
    # Fused input-layer weight: (256, 5).  Rows 0:128 <- fcin1, rows 128:256 <- fcin2.
    win = jnp.zeros((256, 5), jnp.float32)
    win = win.at[0:128, 0:4].set(params["fcin1_w"])          # (128, 4)
    win = win.at[128:256, 4:5].set(params["fcin2_w"])        # (128, 1)
    bin_ = jnp.concatenate([params["fcin1_b"],
                            params["fcin2_b"]])[:, None]     # (256, 1)
    wb = params["fcbody_w"]                                  # (128, 256)
    bb = params["fcbody_b"][:, None]                         # (128, 1)
    wo = params["output_w"] * 0.01                           # (1, 128)  scale folded
    bo = (params["output_b"] * 0.01)[:, None]                # (1, 1)
    xT = x.T                                                 # (5, B) batch-on-lanes

    grid = (pl.cdiv(B, TB),)

    in_specs = [
        pl.BlockSpec((5, TB), lambda i: (0, i)),      # x^T, tiled along batch lanes
        pl.BlockSpec((256, 5), lambda i: (0, 0)),     # fused input weight (resident)
        pl.BlockSpec((256, 1), lambda i: (0, 0)),     # fused input bias
        pl.BlockSpec((128, 256), lambda i: (0, 0)),   # fcBody weight
        pl.BlockSpec((128, 1), lambda i: (0, 0)),     # fcBody bias
        pl.BlockSpec((1, 128), lambda i: (0, 0)),     # output weight (pre-scaled)
        pl.BlockSpec((1, 1), lambda i: (0, 0)),       # output bias (pre-scaled)
    ]
    out_spec = pl.BlockSpec((1, TB), lambda i: (0, i))

    out_T = pl.pallas_call(
        _critic_kernel,
        out_shape=jax.ShapeDtypeStruct((1, B), jnp.float32),
        grid=grid,
        in_specs=in_specs,
        out_specs=out_spec,
        compiler_params=pltpu.CompilerParams(
            dimension_semantics=("parallel",)),
    )(xT, win, bin_, wb, bb, wo, bo)

    return out_T.T                                           # (B, 1)


def init_params(key):
    """Deterministic synthetic weights, PyTorch nn.Linear layout: weight (out, in), bias (out,).

    (The original module loads these from a .mat file; no file I/O here.)
    """
    # TODO(synk): loadMyWeights (scipy.io.loadmat) is file I/O; weights are synthesized in-script.
    ks = jax.random.split(key, 8)

    def w(k, shape, fan_in):
        bound = 1.0 / jnp.sqrt(fan_in)
        return jax.random.uniform(k, shape, jnp.float32, -bound, bound)

    return {
        "fcin1_w": w(ks[0], (128, 4), 4.0),
        "fcin1_b": w(ks[1], (128,), 4.0),
        "fcin2_w": w(ks[2], (128, 1), 1.0),
        "fcin2_b": w(ks[3], (128,), 1.0),
        "fcbody_w": w(ks[4], (128, 256), 256.0),
        "fcbody_b": w(ks[5], (128,), 256.0),
        "output_w": w(ks[6], (1, 128), 128.0),
        "output_b": w(ks[7], (1,), 128.0),
    }


def _reference_forward(x, p):
    """Straight JAX transcription of the PyTorch forward (no fusion, no folding)."""
    x1, x2 = x[:, 0:4], x[:, 4:5]
    fc1 = x1 @ p["fcin1_w"].T + p["fcin1_b"]
    fc2 = x2 @ p["fcin2_w"].T + p["fcin2_b"]
    h = jnp.maximum(jnp.concatenate([fc1, fc2], axis=1), 0.0)
    body = jnp.maximum(h @ p["fcbody_w"].T + p["fcbody_b"], 0.0)
    return (body @ p["output_w"].T + p["output_b"]) * 0.01


if __name__ == "__main__":
    key = jax.random.PRNGKey(0)
    k_x, k_p, k_x2 = jax.random.split(key, 3)
    params = init_params(k_p)

    # Small-batch case: single block (block == full array dims).
    B = 8
    x = jax.random.normal(k_x, (B, 5), dtype=jnp.float32)
    out = jax.block_until_ready(custom_critic_forward(x, params))
    ref = _reference_forward(x, params)
    assert out.shape == (B, 1)
    assert jnp.allclose(out, ref, atol=1e-5, rtol=1e-5), "mismatch vs. JAX reference (B=8)"

    # Multi-block case: exercise the batch-tiled grid (3 tiles of 128 lanes).
    B2 = 384
    x2 = jax.random.normal(k_x2, (B2, 5), dtype=jnp.float32)
    out2 = jax.block_until_ready(custom_critic_forward(x2, params, tb=128))
    ref2 = _reference_forward(x2, params)
    assert out2.shape == (B2, 1)
    assert jnp.allclose(out2, ref2, atol=1e-5, rtol=1e-5), "mismatch vs. JAX reference (B=384)"

    print("KERNEL_OK")
</pallas_src>

<mosaic_0001>
module attributes {stable_mosaic.version = 11 : i64} {
  func.func @_critic_kernel(%arg0: i32, %arg1: memref<5x8xf32, #tpu.memory_space<vmem>>, %arg2: memref<256x5xf32, #tpu.memory_space<vmem>>, %arg3: memref<256x1xf32, #tpu.memory_space<vmem>>, %arg4: memref<128x256xf32, #tpu.memory_space<vmem>>, %arg5: memref<128x1xf32, #tpu.memory_space<vmem>>, %arg6: memref<1x128xf32, #tpu.memory_space<vmem>>, %arg7: memref<1x1xf32, #tpu.memory_space<vmem>>, %arg8: memref<1x8xf32, #tpu.memory_space<vmem>>) attributes {dimension_semantics = [#tpu.dimension_semantics<parallel>], iteration_bounds = array<i64: 1>, scalar_prefetch = 0 : i64, scratch_operands = 0 : i64, tpu.core_type = #tpu.core_type<tc>, window_params = [{transform_indices = @transform_0, window_bounds = array<i64: 5, 8>}, {pipeline_mode = #tpu.pipeline_mode<synchronous>, transform_indices = @transform_1, window_bounds = array<i64: 256, 5>}, {pipeline_mode = #tpu.pipeline_mode<synchronous>, transform_indices = @transform_2, window_bounds = array<i64: 256, 1>}, {pipeline_mode = #tpu.pipeline_mode<synchronous>, transform_indices = @transform_3, window_bounds = array<i64: 128, 256>}, {pipeline_mode = #tpu.pipeline_mode<synchronous>, transform_indices = @transform_4, window_bounds = array<i64: 128, 1>}, {pipeline_mode = #tpu.pipeline_mode<synchronous>, transform_indices = @transform_5, window_bounds = array<i64: 1, 128>}, {pipeline_mode = #tpu.pipeline_mode<synchronous>, transform_indices = @transform_6, window_bounds = array<i64: 1, 1>}, {transform_indices = @transform_7, window_bounds = array<i64: 1, 8>}]} {
    %c0 = arith.constant 0 : index
    %c0_0 = arith.constant 0 : index
    %0 = vector.load %arg1[%c0, %c0_0] : memref<5x8xf32, #tpu.memory_space<vmem>>, vector<5x8xf32>
    %c0_1 = arith.constant 0 : index
    %c0_2 = arith.constant 0 : index
    %1 = vector.load %arg2[%c0_1, %c0_2] : memref<256x5xf32, #tpu.memory_space<vmem>>, vector<256x5xf32>
    %cst = arith.constant dense<0.000000e+00> : vector<256x8xf32>
    %2 = tpu.matmul %1, %0, %cst {dimension_numbers = #tpu.dot_dimension_numbers<[1], [0], [0], [1], [0, 0, 1, 1], [], []>} : vector<256x5xf32>, vector<5x8xf32>, vector<256x8xf32> -> vector<256x8xf32>
    %c0_3 = arith.constant 0 : index
    %c0_4 = arith.constant 0 : index
    %3 = vector.load %arg3[%c0_3, %c0_4] : memref<256x1xf32, #tpu.memory_space<vmem>>, vector<256x1xf32>
    %4 = vector.broadcast %3 : vector<256x1xf32> to vector<256x8xf32>
    %5 = arith.addf %2, %4 : vector<256x8xf32>
    %cst_5 = arith.constant 0.000000e+00 : f32
    %6 = vector.broadcast %cst_5 : f32 to vector<256x8xf32>
    %7 = arith.maximumf %5, %6 : vector<256x8xf32>
    %c0_6 = arith.constant 0 : index
    %c0_7 = arith.constant 0 : index
    %8 = vector.load %arg4[%c0_6, %c0_7] : memref<128x256xf32, #tpu.memory_space<vmem>>, vector<128x256xf32>
    %cst_8 = arith.constant dense<0.000000e+00> : vector<128x8xf32>
    %9 = tpu.matmul %8, %7, %cst_8 {dimension_numbers = #tpu.dot_dimension_numbers<[1], [0], [0], [1], [0, 0, 1, 1], [], []>} : vector<128x256xf32>, vector<256x8xf32>, vector<128x8xf32> -> vector<128x8xf32>
    %c0_9 = arith.constant 0 : index
    %c0_10 = arith.constant 0 : index
    %10 = vector.load %arg5[%c0_9, %c0_10] : memref<128x1xf32, #tpu.memory_space<vmem>>, vector<128x1xf32>
    %11 = vector.broadcast %10 : vector<128x1xf32> to vector<128x8xf32>
    %12 = arith.addf %9, %11 : vector<128x8xf32>
    %cst_11 = arith.constant 0.000000e+00 : f32
    %13 = vector.broadcast %cst_11 : f32 to vector<128x8xf32>
    %14 = arith.maximumf %12, %13 : vector<128x8xf32>
    %c0_12 = arith.constant 0 : index
    %c0_13 = arith.constant 0 : index
    %15 = vector.load %arg6[%c0_12, %c0_13] : memref<1x128xf32, #tpu.memory_space<vmem>>, vector<1x128xf32>
    %cst_14 = arith.constant dense<0.000000e+00> : vector<1x8xf32>
    %16 = tpu.matmul %15, %14, %cst_14 {dimension_numbers = #tpu.dot_dimension_numbers<[1], [0], [0], [1], [0, 0, 1, 1], [], []>} : vector<1x128xf32>, vector<128x8xf32>, vector<1x8xf32> -> vector<1x8xf32>
    %c0_15 = arith.constant 0 : index
    %c0_16 = arith.constant 0 : index
    %17 = vector.load %arg7[%c0_15, %c0_16] : memref<1x1xf32, #tpu.memory_space<vmem>>, vector<1x1xf32>
    %18 = vector.broadcast %17 : vector<1x1xf32> to vector<1x8xf32>
    %19 = arith.addf %16, %18 : vector<1x8xf32>
    %c0_17 = arith.constant 0 : index
    %c0_18 = arith.constant 0 : index
    %20 = vector.load %arg8[%c0_17, %c0_18] : memref<1x8xf32, #tpu.memory_space<vmem>>, vector<1x8xf32>
    tpu.vector_store %arg8[%c0_17, %c0_18], %19 {strides = array<i32>} : memref<1x8xf32, #tpu.memory_space<vmem>>, vector<1x8xf32>,
    return
  }
  func.func @transform_0(%arg0: i32) -> (i32, i32) {
    %c0_i32 = arith.constant 0 : i32
    %c0_i32_0 = arith.constant 0 : i32
    return %c0_i32, %arg0 : i32, i32
  }
  func.func @transform_1(%arg0: i32) -> (i32, i32) {
    %c0_i32 = arith.constant 0 : i32
    %c0_i32_0 = arith.constant 0 : i32
    %c0_i32_1 = arith.constant 0 : i32
    return %c0_i32, %c0_i32_0 : i32, i32
  }
  func.func @transform_2(%arg0: i32) -> (i32, i32) {
    %c0_i32 = arith.constant 0 : i32
    %c0_i32_0 = arith.constant 0 : i32
    %c0_i32_1 = arith.constant 0 : i32
    return %c0_i32, %c0_i32_0 : i32, i32
  }
  func.func @transform_3(%arg0: i32) -> (i32, i32) {
    %c0_i32 = arith.constant 0 : i32
    %c0_i32_0 = arith.constant 0 : i32
    %c0_i32_1 = arith.constant 0 : i32
    return %c0_i32, %c0_i32_0 : i32, i32
  }
  func.func @transform_4(%arg0: i32) -> (i32, i32) {
    %c0_i32 = arith.constant 0 : i32
    %c0_i32_0 = arith.constant 0 : i32
    %c0_i32_1 = arith.constant 0 : i32
    return %c0_i32, %c0_i32_0 : i32, i32
  }
  func.func @transform_5(%arg0: i32) -> (i32, i32) {
    %c0_i32 = arith.constant 0 : i32
    %c0_i32_0 = arith.constant 0 : i32
    %c0_i32_1 = arith.constant 0 : i32
    return %c0_i32, %c0_i32_0 : i32, i32
  }
  func.func @transform_6(%arg0: i32) -> (i32, i32) {
    %c0_i32 = arith.constant 0 : i32
    %c0_i32_0 = arith.constant 0 : i32
    %c0_i32_1 = arith.constant 0 : i32
    return %c0_i32, %c0_i32_0 : i32, i32
  }
  func.func @transform_7(%arg0: i32) -> (i32, i32) {
    %c0_i32 = arith.constant 0 : i32
    %c0_i32_0 = arith.constant 0 : i32
    return %c0_i32, %arg0 : i32, i32
  }
}

</mosaic_0001>

<bundles_post_ra>
// kernel: tpu_custom_call.1
= control target key start
LH: loop header
LB: loop body
LE: loop exit
PB: predicated region body
PF: predicated region fallthrough
CT: control target
= control target key end

     0   :  { %s1418_s0 = inlined_call_operand.vmem [shape: f32[5,8], index: 0, kind: input, shape index: {}]   ;;  %s1419_s1 = inlined_call_operand.vmem [shape: f32[256,5], index: 1, kind: input, shape index: {}]   ;;  %s1420_s2 = inlined_call_operand.vmem [shape: f32[256,1], index: 2, kind: input, shape index: {}]   ;;  %s1421_s3 = inlined_call_operand.vmem [shape: f32[128,256], index: 3, kind: input, shape index: {}]   ;;  %s1422_s4 = inlined_call_operand.vmem [shape: f32[128,1], index: 4, kind: input, shape index: {}]   ;;  %s1423_s5 = inlined_call_operand.vmem [shape: f32[1,128], index: 5, kind: input, shape index: {}]   ;;  %s1424_s6 = inlined_call_operand.<no memory space> [shape: f32[1,1], index: 6, kind: input, shape index: {}]   ;;  %s1425_s7 = inlined_call_operand.hbm [shape: f32[1,8], index: 7, kind: output, shape index: {}]  }
   0x1   :  { %v12_v0 = vstv %s1424_s6 }
   0x2   :  { %13 = vst [vmem:[#allocation2] sm:$0x1] %v12_v0 }
   0x3   :  { %v29_v1 = vld [vmem:[%s1418_s0] sm:$0x1f]  ;;  %vm351_vm0 = vcmask 1044480   ;;  %v93_v2 = vld [vmem:[%s1420_s2 + $0xf8] sm:$0xff]  ;;  %v885_v3 = vmov 0   ;;  %v76_v5 = vld [vmem:[%s1420_s2 + $0x70] sm:$0xff] }
   0x4   :  { %858 = vset.pattern.permute.xlu2 %v885_v3  ;;  %857 = vset.pattern.permute.xlu1 %v885_v3  ;;  %v77_v4 = vld [vmem:[%s1420_s2 + $0x78] sm:$0xff]  ;;  %v30_v6 = vld [vmem:[%s1419_s1] sm:$0xff]  ;;  %vm254_vm1 = vcmask 39936   ;;  %v92_v8 = vld [vmem:[%s1420_s2 + $0xf0] sm:$0xff] }
   0x5   :  { %856 = vset.pattern.permute.xlu0 %v885_v3  ;;  %820 = vmatpush.msk.msra.mxu0 %vm351_vm0, %v29_v1  ;;  %v49_v7 = vld [vmem:[%s1419_s1 + $0x98] sm:$0xff]  ;;  %v91_v9 = vld [vmem:[%s1420_s2 + $0xe8] sm:$0xff]  ;;  %v90_v10 = vld [vmem:[%s1420_s2 + $0xe0] sm:$0xff] }
   0x6   :  { %853 = vmatpush.msk.msra.mxu3 %vm351_vm0, %v29_v1  ;;  %251 = vperm.xlu0 %856, %v93_v2  }
   0x7   :  { %171 = vperm.xlu1 %857, %v77_v4   ;;  %166 = vperm.xlu2 %858, %v76_v5  }
   0x8   :  { %821 = vmatmul.msk.f32.vlgmr.msra.gmra.mxu0 %vm254_vm1, %v30_v6  ;;  %840 = vmatmul.msk.f32.vlgmr.msra.gmra.mxu3 %vm254_vm1, %v49_v7 }
   0x9   :  { %14 = vsyncpa [#allocation4], 0  ;;  %v31_v11 = vld [vmem:[%s1419_s1 + $0x8] sm:$0xff]  ;;  %v50_v12 = vld [vmem:[%s1419_s1 + $0xa0] sm:$0xff]  ;;  %s886_s17 = smov [#allocation3]   ;;  %s811_s21 = sshll.u32 %s1425_s7, 4  ;;  %s812_s21 = int_to_ptr.hbm [resolvable:$true] %s811_s21 }
   0xa   :  { %v75_v13 = vld [vmem:[%s1420_s2 + $0x68] sm:$0xff]  ;;  %v89_v14 = vld [vmem:[%s1420_s2 + $0xd8] sm:$0xff]  ;;  %v74_v15 = vld [vmem:[%s1420_s2 + $0x60] sm:$0xff]  ;;  %s809_s18 = sshll.u32 %s886_s17, 4  ;;  %vm802_vm2 = vcmask 57344   ;;  %s810_s18 = int_to_ptr.vmem [resolvable:$true] %s809_s18 }
   0xb   :  { %v32_v16 = vld [vmem:[%s1419_s1 + $0x10] sm:$0xff]  ;;  %v51_v17 = vld [vmem:[%s1419_s1 + $0xa8] sm:$0xff]  ;;  %v73_v20 = vld [vmem:[%s1420_s2 + $0x58] sm:$0xff] }
   0xc   :  { %v88_v18 = vld [vmem:[%s1420_s2 + $0xd0] sm:$0xff]  ;;  %v87_v19 = vld [vmem:[%s1420_s2 + $0xc8] sm:$0xff]  ;;  %v33_v21 = vld [vmem:[%s1419_s1 + $0x18] sm:$0xff] }
   0xd   :  { %v52_v22 = vld [vmem:[%s1419_s1 + $0xb0] sm:$0xff]  ;;  %v86_v24 = vld [vmem:[%s1420_s2 + $0xc0] sm:$0xff]  ;;  %v71_v25 = vld [vmem:[%s1420_s2 + $0x48] sm:$0xff] }
   0xe   :  { %246 = vperm.xlu0 %856, %v92_v8   ;;  %v72_v23 = vld [vmem:[%s1420_s2 + $0x50] sm:$0xff]  ;;  %v34_v26 = vld [vmem:[%s1419_s1 + $0x20] sm:$0xff]  ;;  %v53_v27 = vld [vmem:[%s1419_s1 + $0xb8] sm:$0xff] }
   0xf   :  { %241 = vperm.xlu1 %857, %v91_v9   ;;  %236 = vperm.xlu2 %858, %v90_v10   ;;  %v85_v28 = vld [vmem:[%s1420_s2 + $0xb8] sm:$0xff]  ;;  %v84_v29 = vld [vmem:[%s1420_s2 + $0xb0] sm:$0xff]  ;;  %v70_v30 = vld [vmem:[%s1420_s2 + $0x40] sm:$0xff] }
  0x10   :  { %822 = vmatmul.msk.f32.gmra.mxu0 %vm254_vm1, %v31_v11  ;;  %841 = vmatmul.msk.f32.gmra.mxu3 %vm254_vm1, %v50_v12  ;;  %v35_v31 = vld [vmem:[%s1419_s1 + $0x28] sm:$0xff]  ;;  %v54_v32 = vld [vmem:[%s1419_s1 + $0xc0] sm:$0xff]  ;;  %v69_v33 = vld [vmem:[%s1420_s2 + $0x38] sm:$0xff] }
  0x11   :  { %v83_v34 = vld [vmem:[%s1420_s2 + $0xa8] sm:$0xff]  ;;  %v68_v35 = vld [vmem:[%s1420_s2 + $0x30] sm:$0xff]  ;;  %v82_v38 = vld [vmem:[%s1420_s2 + $0xa0] sm:$0xff] }
  0x12   :  { %v36_v36 = vld [vmem:[%s1419_s1 + $0x30] sm:$0xff]  ;;  %v55_v37 = vld [vmem:[%s1419_s1 + $0xc8] sm:$0xff]  ;;  %v81_v39 = vld [vmem:[%s1420_s2 + $0x98] sm:$0xff] }
  0x13   :  { %v67_v40 = vld [vmem:[%s1420_s2 + $0x28] sm:$0xff]  ;;  %v37_v41 = vld [vmem:[%s1419_s1 + $0x38] sm:$0xff]  ;;  %v56_v42 = vld [vmem:[%s1419_s1 + $0xd0] sm:$0xff] }
  0x14   :  { %v66_v43 = vld [vmem:[%s1420_s2 + $0x20] sm:$0xff]  ;;  %v80_v44 = vld [vmem:[%s1420_s2 + $0x90] sm:$0xff]  ;;  %v65_v45 = vld [vmem:[%s1420_s2 + $0x18] sm:$0xff] }
  0x15   :  { %v38_v46 = vld [vmem:[%s1419_s1 + $0x40] sm:$0xff]  ;;  %v57_v47 = vld [vmem:[%s1419_s1 + $0xd8] sm:$0xff]  ;;  %v79_v48 = vld [vmem:[%s1420_s2 + $0x88] sm:$0xff] }
  0x16   :  { %161 = vperm.xlu0 %856, %v75_v13   ;;  %v78_v49 = vld [vmem:[%s1420_s2 + $0x80] sm:$0xff]  ;;  %v64_v50 = vld [vmem:[%s1420_s2 + $0x10] sm:$0xff]  ;;  %v39_v51 = vld [vmem:[%s1419_s1 + $0x48] sm:$0xff] }
  0x17   :  { %231 = vperm.xlu1 %857, %v89_v14   ;;  %156 = vperm.xlu2 %858, %v74_v15   ;;  %v58_v52 = vld [vmem:[%s1419_s1 + $0xe0] sm:$0xff]  ;;  %v63_v53 = vld [vmem:[%s1420_s2 + $0x8] sm:$0xff]  ;;  %v547_v54 = vld [vmem:[%s1422_s4 + $0x78] sm:$0xff] }
  0x18   :  { %823 = vmatmul.msk.f32.gmra.mxu0 %vm254_vm1, %v32_v16  ;;  %842 = vmatmul.msk.f32.gmra.mxu3 %vm254_vm1, %v51_v17  ;;  %v62_v55 = vld [vmem:[%s1420_s2] sm:$0xff]  ;;  %v40_v56 = vld [vmem:[%s1419_s1 + $0x50] sm:$0xff]  ;;  %v59_v57 = vld [vmem:[%s1419_s1 + $0xe8] sm:$0xff] }
  0x19   :  { %v546_v58 = vld [vmem:[%s1422_s4 + $0x70] sm:$0xff]  ;;  %v544_v59 = vld [vmem:[%s1422_s4 + $0x60] sm:$0xff]  ;;  %v545_v60 = vld [vmem:[%s1422_s4 + $0x68] sm:$0xff] }
  0x1a   :  { %v41_v61 = vld [vmem:[%s1419_s1 + $0x58] sm:$0xff]  ;;  %v60_v62 = vld [vmem:[%s1419_s1 + $0xf0] sm:$0xff]  ;;  %v541_v0 = vld [vmem:[%s1422_s4 + $0x48] sm:$0xff] }
  0x1b   :  { %v543_v63 = vld [vmem:[%s1422_s4 + $0x58] sm:$0xff]  ;;  %v542_v1 = vld [vmem:[%s1422_s4 + $0x50] sm:$0xff]  ;;  %v42_v2 = vld [vmem:[%s1419_s1 + $0x60] sm:$0xff] }
  0x1c   :  { %v61_v3 = vld [vmem:[%s1419_s1 + $0xf8] sm:$0xff]  ;;  %v540_v4 = vld [vmem:[%s1422_s4 + $0x40] sm:$0xff]  ;;  %v538_v5 = vld [vmem:[%s1422_s4 + $0x30] sm:$0xff] }
  0x1d   :  { %v539_v6 = vld [vmem:[%s1422_s4 + $0x38] sm:$0xff]  ;;  %v43_v7 = vld [vmem:[%s1419_s1 + $0x68] sm:$0xff]  ;;  %v536_v10 = vld [vmem:[%s1422_s4 + $0x20] sm:$0xff] }
  0x1e   :  { %226 = vperm.xlu0 %856, %v88_v18   ;;  %v537_v8 = vld [vmem:[%s1422_s4 + $0x28] sm:$0xff]  ;;  %v535_v9 = vld [vmem:[%s1422_s4 + $0x18] sm:$0xff]  ;;  %v44_v11 = vld [vmem:[%s1419_s1 + $0x70] sm:$0xff] }
  0x1f   :  { %221 = vperm.xlu2 %858, %v87_v19   ;;  %151 = vperm.xlu1 %857, %v73_v20   ;;  %v534_v12 = vld [vmem:[%s1422_s4 + $0x10] sm:$0xff]  ;;  %v532_v13 = vld [vmem:[%s1422_s4] sm:$0xff]  ;;  %v533_v14 = vld [vmem:[%s1422_s4 + $0x8] sm:$0xff] }
  0x20   :  { %824 = vmatmul.msk.f32.gmra.mxu0 %vm254_vm1, %v33_v21  ;;  %843 = vmatmul.msk.f32.gmra.mxu3 %vm254_vm1, %v52_v22  ;;  %v45_v15 = vld [vmem:[%s1419_s1 + $0x78] sm:$0xff]  ;;  %v775_v16 = vld [vmem:[#allocation2] sm:$0x1]  ;;  %v47_v21 = vld [vmem:[%s1419_s1 + $0x88] sm:$0xff] }
  0x21   :  { %v46_v18 = vld [vmem:[%s1419_s1 + $0x80] sm:$0xff] }
  0x26   :  { %146 = vperm.xlu0 %856, %v72_v23  }
  0x27   :  { %216 = vperm.xlu1 %857, %v86_v24   ;;  %141 = vperm.xlu2 %858, %v71_v25   ;;  %v48_v24 = vld [vmem:[%s1419_s1 + $0x90] sm:$0xff] }
  0x28   :  { %825 = vmatmul.msk.f32.gmra.mxu0 %vm254_vm1, %v34_v26  ;;  %844 = vmatmul.msk.f32.gmra.mxu3 %vm254_vm1, %v53_v27 }
  0x2e   :  { %211 = vperm.xlu0 %856, %v85_v28  }
  0x2f   :  { %206 = vperm.xlu2 %858, %v84_v29   ;;  %136 = vperm.xlu1 %857, %v70_v30  }
  0x30   :  { %826 = vmatmul.msk.f32.gmra.mxu0 %vm254_vm1, %v35_v31  ;;  %845 = vmatmul.msk.f32.gmra.mxu3 %vm254_vm1, %v54_v32 }
  0x36   :  { %131 = vperm.xlu0 %856, %v69_v33  }
  0x37   :  { %201 = vperm.xlu1 %857, %v83_v34   ;;  %126 = vperm.xlu2 %858, %v68_v35  }
  0x38   :  { %827 = vmatmul.msk.f32.gmra.mxu0 %vm254_vm1, %v36_v36  ;;  %846 = vmatmul.msk.f32.gmra.mxu3 %vm254_vm1, %v55_v37 }
  0x3e   :  { %196 = vperm.xlu0 %856, %v82_v38  }
  0x3f   :  { %191 = vperm.xlu2 %858, %v81_v39   ;;  %121 = vperm.xlu1 %857, %v67_v40  }
  0x40   :  { %828 = vmatmul.msk.f32.gmra.mxu0 %vm254_vm1, %v37_v41  ;;  %847 = vmatmul.msk.f32.gmra.mxu3 %vm254_vm1, %v56_v42 }
  0x46   :  { %116 = vperm.xlu0 %856, %v66_v43  }
  0x47   :  { %186 = vperm.xlu1 %857, %v80_v44   ;;  %111 = vperm.xlu2 %858, %v65_v45  }
  0x48   :  { %829 = vmatmul.msk.f32.gmra.mxu0 %vm254_vm1, %v38_v46  ;;  %848 = vmatmul.msk.f32.gmra.mxu3 %vm254_vm1, %v57_v47 }
  0x4e   :  { %181 = vperm.xlu0 %856, %v79_v48  }
  0x4f   :  { %176 = vperm.xlu2 %858, %v78_v49   ;;  %106 = vperm.xlu1 %857, %v64_v50  }
  0x50   :  { %830 = vmatmul.msk.f32.gmra.mxu0 %vm254_vm1, %v39_v51  ;;  %849 = vmatmul.msk.f32.gmra.mxu3 %vm254_vm1, %v58_v52 }
  0x56   :  { %101 = vperm.xlu0 %856, %v63_v53  }
  0x57   :  { %625 = vperm.xlu2 %858, %v547_v54   ;;  %96 = vperm.xlu1 %857, %v62_v55  }
  0x58   :  { %831 = vmatmul.msk.f32.gmra.mxu0 %vm254_vm1, %v40_v56  ;;  %850 = vmatmul.msk.f32.gmra.mxu3 %vm254_vm1, %v59_v57 }
  0x5e   :  { %620 = vperm.xlu0 %856, %v546_v58  }
  0x5f   :  { %610 = vperm.xlu2 %858, %v544_v59   ;;  %615 = vperm.xlu1 %857, %v545_v60  }
  0x60   :  { %832 = vmatmul.msk.f32.gmra.mxu0 %vm254_vm1, %v41_v61  ;;  %851 = vmatmul.msk.f32.gmra.mxu3 %vm254_vm1, %v60_v62 }
  0x61   :  { %v1229_v35 = vpop.permute.xlu2 %166 }
  0x66   :  { %605 = vperm.xlu0 %856, %v543_v63  }
  0x67   :  { %595 = vperm.xlu2 %858, %v541_v0   ;;  %600 = vperm.xlu1 %857, %v542_v1  }
  0x68   :  { %833 = vmatmul.msk.f32.gmra.mxu0 %vm254_vm1, %v42_v2  ;;  %852 = vmatmul.msk.f32.gmra.mxu3 %vm254_vm1, %v61_v3 }
  0x69   :  { %v237_v40 = vpop.permute.xlu2 %236 }
  0x6e   :  { %590 = vperm.xlu0 %856, %v540_v4  }
  0x6f   :  { %580 = vperm.xlu2 %858, %v538_v5   ;;  %585 = vperm.xlu1 %857, %v539_v6  }
  0x70   :  { %834 = vmatmul.msk.f32.gmra.mxu0 %vm254_vm1, %v43_v7 }
  0x71   :  { %v1237_v46 = vpop.permute.xlu2 %156 }
  0x76   :  { %575 = vperm.xlu0 %856, %v537_v8  }
  0x77   :  { %565 = vperm.xlu2 %858, %v535_v9   ;;  %570 = vperm.xlu1 %857, %v536_v10  }
  0x78   :  { %835 = vmatmul.msk.f32.gmra.mxu0 %vm254_vm1, %v44_v11  ;;  %v252_v31 = vpop.permute.xlu0 %251 }
  0x79   :  { %v1225_v32 = vpop.permute.xlu1 %171  ;;  %v222_v52 = vpop.permute.xlu2 %221 }
  0x7e   :  { %560 = vperm.xlu0 %856, %v534_v12  }
  0x7f   :  { %550 = vperm.xlu2 %858, %v532_v13   ;;  %555 = vperm.xlu1 %857, %v533_v14  }
  0x80   :  { %836 = vmatmul.msk.f32.gmra.mxu0 %vm254_vm1, %v45_v15  ;;  %v247_v36 = vpop.permute.xlu0 %246 }
  0x81   :  { %v242_v38 = vpop.permute.xlu1 %241  ;;  %v1247_v57 = vpop.permute.xlu2 %141 }
  0x85   :  { %v1193_v17 = vpop.f32.mrf.mxu0 }
  0x86   :  { %778 = vperm.xlu0 %856, %v775_v16  }
  0x88   :  { %837 = vmatmul.msk.f32.gmra.mxu0 %vm254_vm1, %v46_v18  ;;  %v1233_v42 = vpop.permute.xlu0 %161 }
  0x89   :  { %v232_v44 = vpop.permute.xlu1 %231  ;;  %v207_v62 = vpop.permute.xlu2 %206 }
  0x8b   :  { %v1199_v19 = vpop.f32.mrf.mxu3 }
  0x8d   :  { %v1201_v20 = vpop.f32.mrf.mxu0 }
  0x90   :  { %838 = vmatmul.msk.f32.gmra.mxu0 %vm254_vm1, %v47_v21  ;;  %v227_v48 = vpop.permute.xlu0 %226 }
  0x91   :  { %v1241_v49 = vpop.permute.xlu1 %151  ;;  %v127_v13 = vpop.permute.xlu2 %126 }
  0x93   :  { %v1207_v22 = vpop.f32.mrf.mxu3 }
  0x95   :  { %v1209_v23 = vpop.f32.mrf.mxu0 }
  0x98   :  { %839 = vmatmul.msk.f32.gmra.mxu0 %vm254_vm1, %v48_v24  ;;  %v1245_v53 = vpop.permute.xlu0 %146 }
  0x99   :  { %v217_v54 = vpop.permute.xlu1 %216 }
  0x9b   :  { %v1215_v25 = vpop.f32.mrf.mxu3 }
  0x9d   :  { %v1217_v26 = vpop.f32.mrf.mxu0 }
  0xa0   :  { %v212_v58 = vpop.permute.xlu0 %211 }
  0xa1   :  { %v1249_v60 = vpop.permute.xlu1 %136 }
  0xa3   :  { %v1219_v27 = vpop.f32.mrf.mxu3 }
  0xa5   :  { %v1221_v28 = vpop.f32.mrf.mxu0 }
  0xa8   :  { %v1251_v2 = vpop.permute.xlu0 %131 }
  0xa9   :  { %v202_v6 = vpop.permute.xlu1 %201 }
  0xab   :  { %v441_v29 = vpop.f32.mrf.mxu3 }
  0xad   :  { %v1223_v30 = vpop.f32.mrf.mxu0 }
  0xb0   :  { %v197_v18 = vpop.permute.xlu0 %196 }
  0xb3   :  { %v444_v33 = vpop.f32.mrf.mxu3 }
  0xb4   :  { %v445_v21 = vadd.f32 %v444_v33, %v217_v54  ;;  %v192_v33 = vpop.permute.xlu2 %191  ;;  %v433_v54 = vadd.f32 %v1207_v22, %v197_v18 }
  0xb5   :  { %v1227_v34 = vpop.f32.mrf.mxu0 }
  0xbb   :  { %v447_v37 = vpop.f32.mrf.mxu3 }
  0xbc   :  { %v448_v15 = vadd.f32 %v447_v37, %v222_v52 }
  0xbd   :  { %v1231_v39 = vpop.f32.mrf.mxu0 }
  0xc3   :  { %v450_v41 = vpop.f32.mrf.mxu3 }
  0xc4   :  { %v451_v11 = vadd.f32 %v450_v41, %v227_v48 }
  0xc5   :  { %v1235_v43 = vpop.f32.mrf.mxu0 }
  0xc6   :  { %v494_v24 = vmax.f32 %v451_v11, 0.0 }
  0xcb   :  { %v453_v45 = vpop.f32.mrf.mxu3 }
  0xcc   :  { %v454_v9 = vadd.f32 %v453_v45, %v232_v44  ;;  %v492_v44 = vmax.f32 %v445_v21, 0.0  ;;  %v436_v45 = vadd.f32 %v1215_v25, %v202_v6 }
  0xcd   :  { %v1239_v47 = vpop.f32.mrf.mxu0 }
  0xce   :  { %v495_v16 = vmax.f32 %v454_v9, 0.0 }
  0xd3   :  { %v456_v50 = vpop.f32.mrf.mxu3 }
  0xd4   :  { %v457_v7 = vadd.f32 %v456_v50, %v237_v40  ;;  %v439_v40 = vadd.f32 %v1219_v27, %v207_v62  ;;  %v117_v27 = vpop.permute.xlu0 %116 }
  0xd5   :  { %v1243_v51 = vpop.f32.mrf.mxu0 }
  0xd6   :  { %v496_v12 = vmax.f32 %v457_v7, 0.0  ;;  %v490_v52 = vmax.f32 %v439_v40, 0.0  ;;  %v391_v7 = vadd.f32 %v1227_v34, %v127_v13  ;;  %v502_v40 = vld [vmem:[%s1421_s3 + $0x10] sm:$0xff] }
  0xdb   :  { %v459_v55 = vpop.f32.mrf.mxu3 }
  0xdc   :  { %v460_v4 = vadd.f32 %v459_v55, %v242_v38  ;;  %v493_v38 = vmax.f32 %v448_v15, 0.0 }
  0xdd   :  { %v405_v56 = vpop.f32.mrf.mxu0 }
  0xde   :  { %v497_v10 = vmax.f32 %v460_v4, 0.0  ;;  %v112_v4 = vpop.permute.xlu2 %111 }
  0xdf   :  { %v382_v9 = vadd.f32 %v1217_v26, %v112_v4 }
  0xe1   :  { %v471_v15 = vmax.f32 %v382_v9, 0.0 }
  0xe3   :  { %v462_v59 = vpop.f32.mrf.mxu3 }
  0xe4   :  { %v463_v0 = vadd.f32 %v462_v59, %v247_v36  ;;  %v442_v36 = vadd.f32 %v441_v29, %v212_v58  ;;  %v430_v58 = vadd.f32 %v1199_v19, %v192_v33  ;;  %v489_v59 = vmax.f32 %v436_v45, 0.0  ;;  %v507_v45 = vld [vmem:[%s1421_s3 + $0x38] sm:$0xff] }
  0xe5   :  { %v408_v61 = vpop.f32.mrf.mxu0  ;;  %v400_v19 = vadd.f32 %v1239_v47, %v1247_v57  ;;  %v511_v33 = vld [vmem:[%s1421_s3 + $0x58] sm:$0xff] }
  0xe6   :  { %v498_v8 = vmax.f32 %v463_v0, 0.0  ;;  %v491_v48 = vmax.f32 %v442_v36, 0.0  ;;  %v409_v25 = vadd.f32 %v408_v61, %v1237_v46  ;;  %v182_v61 = vpop.permute.xlu0 %181 }
  0xeb   :  { %v465_v63 = vpop.f32.mrf.mxu3 }
  0xec   :  { %v466_v1 = vadd.f32 %v465_v63, %v252_v31  ;;  %v122_v31 = vpop.permute.xlu1 %121  ;;  %v488_v63 = vmax.f32 %v433_v54, 0.0  ;;  %v513_v54 = vld [vmem:[%s1421_s3 + $0x68] sm:$0xff] }
  0xed   :  { %v411_v3 = vpop.f32.mrf.mxu0  ;;  %v388_v57 = vadd.f32 %v1223_v30, %v122_v31 }
  0xee   :  { %v499_v5 = vmax.f32 %v466_v1, 0.0  ;;  %v412_v29 = vadd.f32 %v411_v3, %v1233_v42  ;;  %v487_v42 = vmax.f32 %v430_v58, 0.0  ;;  %v403_v1 = vadd.f32 %v1243_v51, %v1245_v53  ;;  %v517_v58 = vld [vmem:[%s1421_s3 + $0x88] sm:$0xff] }
  0xef   :  { %v480_v3 = vmax.f32 %v409_v25, 0.0  ;;  %v477_v51 = vmax.f32 %v400_v19, 0.0  ;;  %v519_v25 = vld [vmem:[%s1421_s3 + $0x98] sm:$0xff] }
  0xf0   :  { %693 = vmatpush.msra.mxu2 %v499_v5  ;;  %v481_v0 = vmax.f32 %v412_v29, 0.0  ;;  %v394_v5 = vadd.f32 %v1231_v39, %v1251_v2  ;;  %v102_v39 = vpop.permute.xlu0 %101  ;;  %v512_v29 = vld [vmem:[%s1421_s3 + $0x60] sm:$0xff] }
  0xf2   :  { %694 = vmatpush.msra.mxu2 %v498_v8  ;;  %v475_v8 = vmax.f32 %v394_v5, 0.0 }
  0xf4   :  { %695 = vmatpush.msra.mxu2 %v497_v10  ;;  %v473_v10 = vmax.f32 %v388_v57, 0.0 }
  0xf5   :  { %v414_v14 = vpop.f32.mrf.mxu0 }
  0xf6   :  { %696 = vmatpush.msra.mxu2 %v496_v12  ;;  %v415_v37 = vadd.f32 %v414_v14, %v1229_v35  ;;  %v187_v35 = vpop.permute.xlu1 %186  ;;  %v177_v14 = vpop.permute.xlu2 %176 }
  0xf8   :  { %697 = vmatpush.msra.mxu2 %v495_v16  ;;  %v482_v62 = vmax.f32 %v415_v37, 0.0  ;;  %v376_v16 = vadd.f32 %v1201_v20, %v102_v39  ;;  %v500_v20 = vld [vmem:[%s1421_s3] sm:$0xff]  ;;  %v509_v37 = vld [vmem:[%s1421_s3 + $0x48] sm:$0xff] }
  0xfa   :  { %698 = vmatpush.msra.mxu2 %v494_v24  ;;  %v469_v31 = vmax.f32 %v376_v16, 0.0 }
  0xfc   :  { %699 = vmatpush.msra.mxu2 %v493_v38 }
  0xfd   :  { %v417_v41 = vpop.f32.mrf.mxu0 }
  0xfe   :  { %700 = vmatpush.msra.mxu2 %v492_v44  ;;  %v418_v50 = vadd.f32 %v417_v41, %v1225_v32  ;;  %v406_v32 = vadd.f32 %v405_v56, %v1241_v49  ;;  %v397_v49 = vadd.f32 %v1235_v43, %v1249_v60  ;;  %v478_v56 = vmax.f32 %v403_v1, 0.0  ;;  %v107_v53 = vpop.permute.xlu1 %106  ;;  %v505_v44 = vld [vmem:[%s1421_s3 + $0x28] sm:$0xff]  ;;  %v504_v41 = vld [vmem:[%s1421_s3 + $0x20] sm:$0xff] }
  0xff   :  { %v474_v43 = vmax.f32 %v391_v7, 0.0  ;;  %v385_v60 = vadd.f32 %v1221_v28, %v117_v27  ;;  %v379_v12 = vadd.f32 %v1209_v23, %v107_v53  ;;  %v501_v23 = vld [vmem:[%s1421_s3 + $0x8] sm:$0xff]  ;;  %v514_v27 = vld [vmem:[%s1421_s3 + $0x70] sm:$0xff]  ;;  %v528_v53 = vld [vmem:[%s1421_s3 + $0xe0] sm:$0xff] }
 0x100   :  { %701 = vmatpush.msra.mxu2 %v491_v48  ;;  %v483_v55 = vmax.f32 %v418_v50, 0.0  ;;  %v479_v46 = vmax.f32 %v406_v32, 0.0  ;;  %v476_v47 = vmax.f32 %v397_v49, 0.0  ;;  %v506_v48 = vld [vmem:[%s1421_s3 + $0x30] sm:$0xff]  ;;  %v508_v50 = vld [vmem:[%s1421_s3 + $0x40] sm:$0xff]  ;;  %v525_v1 = vld [vmem:[%s1421_s3 + $0xc8] sm:$0xff] }
 0x101   :  { %v472_v11 = vmax.f32 %v385_v60, 0.0  ;;  %v470_v21 = vmax.f32 %v379_v12, 0.0  ;;  %v520_v32 = vld [vmem:[%s1421_s3 + $0xa0] sm:$0xff]  ;;  %v527_v49 = vld [vmem:[%s1421_s3 + $0xd8] sm:$0xff] }
 0x102   :  { %628 = vmatpush.msra.mxu1 %v483_v55  ;;  %702 = vmatpush.msra.mxu2 %v490_v52  ;;  %v510_v52 = vld [vmem:[%s1421_s3 + $0x50] sm:$0xff]  ;;  %v515_v55 = vld [vmem:[%s1421_s3 + $0x78] sm:$0xff] }
 0x104   :  { %629 = vmatpush.msra.mxu1 %v482_v62  ;;  %703 = vmatpush.msra.mxu2 %v489_v59  ;;  %v516_v59 = vld [vmem:[%s1421_s3 + $0x80] sm:$0xff]  ;;  %v518_v62 = vld [vmem:[%s1421_s3 + $0x90] sm:$0xff] }
 0x105   :  { %v420_v22 = vpop.f32.mrf.mxu0 }
 0x106   :  { %630 = vmatpush.msra.mxu1 %v481_v0  ;;  %704 = vmatpush.msra.mxu2 %v488_v63  ;;  %v97_v30 = vpop.permute.xlu1 %96  ;;  %v421_v18 = vadd.f32 %v420_v22, %v177_v14  ;;  %v1340_v63 = vpop.permute.xlu2 %625  ;;  %v523_v0 = vld [vmem:[%s1421_s3 + $0xb8] sm:$0xff]  ;;  %v522_v22 = vld [vmem:[%s1421_s3 + $0xb0] sm:$0xff] }
 0x107   :  { %v373_v26 = vadd.f32 %v1193_v17, %v97_v30  ;;  %v503_v17 = vld [vmem:[%s1421_s3 + $0x18] sm:$0xff] }
 0x108   :  { %631 = vmatpush.msra.mxu1 %v480_v3  ;;  %705 = vmatpush.msra.mxu2 %v487_v42  ;;  %v484_v36 = vmax.f32 %v421_v18, 0.0  ;;  %v524_v3 = vld [vmem:[%s1421_s3 + $0xc0] sm:$0xff] }
 0x109   :  { %v468_v38 = vmax.f32 %v373_v26, 0.0 }
 0x10a   :  { %632 = vmatpush.msra.mxu1 %v479_v46 }
 0x10c   :  { %633 = vmatpush.msra.mxu1 %v478_v56  ;;  %v526_v56 = vld [vmem:[%s1421_s3 + $0xd0] sm:$0xff] }
 0x10d   :  { %v423_v6 = vpop.f32.mrf.mxu0 }
 0x10e   :  { %634 = vmatpush.msra.mxu1 %v477_v51  ;;  %v424_v34 = vadd.f32 %v423_v6, %v182_v61  ;;  %v1351_v42 = vpop.permute.xlu2 %610  ;;  %v1359_v19 = vpop.permute.xlu1 %615  ;;  %v529_v51 = vld [vmem:[%s1421_s3 + $0xe8] sm:$0xff] }
 0x10f   :  { %v1369_v61 = vpop.permute.xlu0 %620 }
 0x110   :  { %635 = vmatpush.msra.mxu1 %v476_v47  ;;  %v485_v24 = vmax.f32 %v424_v34, 0.0  ;;  %v531_v47 = vld [vmem:[%s1421_s3 + $0xf8] sm:$0xff] }
 0x112   :  { %636 = vmatpush.msra.mxu1 %v475_v8  ;;  %v530_v8 = vld [vmem:[%s1421_s3 + $0xf0] sm:$0xff] }
 0x114   :  { %637 = vmatpush.msra.mxu1 %v474_v43 }
 0x115   :  { %v426_v2 = vpop.f32.mrf.mxu0 }
 0x116   :  { %v427_v13 = vadd.f32 %v426_v2, %v187_v35  ;;  %638 = vmatpush.msra.mxu1 %v473_v10  ;;  %v521_v35 = vld [vmem:[%s1421_s3 + $0xa8] sm:$0xff]  ;;  %v1361_v46 = vpop.permute.xlu2 %595  ;;  %v1371_v4 = vpop.permute.xlu1 %600 }
 0x117   :  { %v1379_v6 = vpop.permute.xlu0 %605 }
 0x118   :  { %v486_v28 = vmax.f32 %v427_v13, 0.0  ;;  %639 = vmatpush.msra.mxu1 %v472_v11 }
 0x11a   :  { %640 = vmatpush.msra.mxu1 %v471_v15  ;;  %706 = vmatpush.msra.mxu2 %v486_v28 }
 0x11c   :  { %641 = vmatpush.msra.mxu1 %v470_v21  ;;  %707 = vmatpush.msra.mxu2 %v485_v24 }
 0x11e   :  { %642 = vmatpush.msra.mxu1 %v469_v31  ;;  %708 = vmatpush.msra.mxu2 %v484_v36  ;;  %v581_v5 = vpop.permute.xlu2 %580  ;;  %v586_v7 = vpop.permute.xlu1 %585 }
 0x11f   :  { %709 = vmatmul.f32.vlgmr.msra.gmra.mxu2 %v501_v23  ;;  %v591_v43 = vpop.permute.xlu0 %590 }
 0x120   :  { %643 = vmatpush.msra.mxu1 %v468_v38 }
 0x121   :  { %644 = vmatmul.f32.vlgmr.msra.gmra.mxu1 %v500_v20 }
 0x126   :  { %v566_v57 = vpop.permute.xlu2 %565  ;;  %v571_v60 = vpop.permute.xlu1 %570 }
 0x127   :  { %712 = vmatmul.f32.gmra.mxu2 %v503_v17  ;;  %v576_v12 = vpop.permute.xlu0 %575 }
 0x129   :  { %647 = vmatmul.f32.gmra.mxu1 %v502_v40 }
 0x12e   :  { %v551_v10 = vpop.permute.xlu2 %550  ;;  %v556_v13 = vpop.permute.xlu1 %555 }
 0x12f   :  { %715 = vmatmul.f32.gmra.mxu2 %v505_v44  ;;  %v561_v18 = vpop.permute.xlu0 %560 }
 0x131   :  { %650 = vmatmul.f32.gmra.mxu1 %v504_v41 }
 0x137   :  { %718 = vmatmul.f32.gmra.mxu2 %v507_v45 }
 0x139   :  { %653 = vmatmul.f32.gmra.mxu1 %v506_v48 }
 0x13f   :  { %721 = vmatmul.f32.gmra.mxu2 %v509_v37 }
 0x141   :  { %656 = vmatmul.f32.gmra.mxu1 %v508_v50 }
 0x147   :  { %724 = vmatmul.f32.gmra.mxu2 %v511_v33 }
 0x149   :  { %659 = vmatmul.f32.gmra.mxu1 %v510_v52 }
 0x14f   :  { %727 = vmatmul.f32.gmra.mxu2 %v513_v54 }
 0x151   :  { %662 = vmatmul.f32.gmra.mxu1 %v512_v29 }
 0x157   :  { %730 = vmatmul.f32.gmra.mxu2 %v515_v55 }
 0x159   :  { %665 = vmatmul.f32.gmra.mxu1 %v514_v27 }
 0x15f   :  { %733 = vmatmul.f32.gmra.mxu2 %v517_v58 }
 0x161   :  { %668 = vmatmul.f32.gmra.mxu1 %v516_v59 }
 0x167   :  { %736 = vmatmul.f32.gmra.mxu2 %v519_v25 }
 0x169   :  { %671 = vmatmul.f32.gmra.mxu1 %v518_v62 }
 0x16f   :  { %739 = vmatmul.f32.gmra.mxu2 %v521_v35 }
 0x171   :  { %674 = vmatmul.f32.gmra.mxu1 %v520_v32 }
 0x177   :  { %742 = vmatmul.f32.gmra.mxu2 %v523_v0 }
 0x179   :  { %677 = vmatmul.f32.gmra.mxu1 %v522_v22 }
 0x17f   :  { %745 = vmatmul.f32.gmra.mxu2 %v525_v1 }
 0x181   :  { %680 = vmatmul.f32.gmra.mxu1 %v524_v3 }
 0x187   :  { %748 = vmatmul.f32.gmra.mxu2 %v527_v49 }
 0x189   :  { %683 = vmatmul.f32.gmra.mxu1 %v526_v56 }
 0x18f   :  { %751 = vmatmul.f32.gmra.mxu2 %v529_v51 }
 0x191   :  { %686 = vmatmul.f32.gmra.mxu1 %v528_v53 }
 0x197   :  { %754 = vmatmul.f32.gmra.mxu2 %v531_v47 }
 0x199   :  { %689 = vmatmul.f32.gmra.mxu1 %v530_v8 }
 0x19e   :  { %v645_v9 = vpop.f32.mrf.mxu1 }
 0x19f   :  { %v646_v39 = vadd.f32 %v645_v9, %v551_v10 }
 0x1a2   :  { %v710_v2 = vpop.f32.mrf.mxu2 }
 0x1a3   :  { %v1387_v11 = vadd.f32 %v710_v2, %v646_v39 }
 0x1a6   :  { %v648_v34 = vpop.f32.mrf.mxu1 }
 0x1a7   :  { %v649_v14 = vadd.f32 %v648_v34, %v556_v13 }
 0x1aa   :  { %v713_v30 = vpop.f32.mrf.mxu2 }
 0x1ab   :  { %v1389_v15 = vadd.f32 %v713_v30, %v649_v14 }
 0x1ae   :  { %v651_v16 = vpop.f32.mrf.mxu1 }
 0x1af   :  { %v652_v28 = vadd.f32 %v651_v16, %v561_v18 }
 0x1b2   :  { %v716_v21 = vpop.f32.mrf.mxu2 }
 0x1b3   :  { %v1391_v26 = vadd.f32 %v716_v21, %v652_v28 }
 0x1b6   :  { %v654_v24 = vpop.f32.mrf.mxu1 }
 0x1b7   :  { %v655_v31 = vadd.f32 %v654_v24, %v566_v57 }
 0x1ba   :  { %v719_v36 = vpop.f32.mrf.mxu2 }
 0x1bb   :  { %v1393_v23 = vadd.f32 %v719_v36, %v655_v31 }
 0x1be   :  { %v657_v38 = vpop.f32.mrf.mxu1 }
 0x1bf   :  { %v658_v20 = vadd.f32 %v657_v38, %v571_v60  ;;  %v761_v38 = vmax.f32 %v1393_v23, 0.0 }
 0x1c2   :  { %v722_v17 = vpop.f32.mrf.mxu2 }
 0x1c3   :  { %v1395_v40 = vadd.f32 %v722_v17, %v658_v20  ;;  %v760_v20 = vmax.f32 %v1391_v26, 0.0  ;;  %v759_v17 = vmax.f32 %v1389_v15, 0.0 }
 0x1c6   :  { %v660_v44 = vpop.f32.mrf.mxu1 }
 0x1c7   :  { %v661_v41 = vadd.f32 %v660_v44, %v576_v12  ;;  %v758_v44 = vmax.f32 %v1387_v11, 0.0 }
 0x1ca   :  { %v725_v45 = vpop.f32.mrf.mxu2 }
 0x1cb   :  { %v1397_v48 = vadd.f32 %v725_v45, %v661_v41  ;;  %v774_v41 = vld [vmem:[%s1423_s5] sm:$0x1] }
 0x1cd   :  { %v763_v36 = vmax.f32 %v1397_v48, 0.0 }
 0x1ce   :  { %v663_v37 = vpop.f32.mrf.mxu1 }
 0x1cf   :  { %v664_v50 = vadd.f32 %v663_v37, %v581_v5 }
 0x1d2   :  { %v728_v33 = vpop.f32.mrf.mxu2 }
 0x1d3   :  { %v729_v52 = vadd.f32 %v728_v33, %v664_v50 }
 0x1d6   :  { %v666_v54 = vpop.f32.mrf.mxu1 }
 0x1d7   :  { %v667_v29 = vadd.f32 %v666_v54, %v586_v7 }
 0x1da   :  { %v731_v55 = vpop.f32.mrf.mxu2 }
 0x1db   :  { %v732_v27 = vadd.f32 %v731_v55, %v667_v29 }
 0x1dd   :  { %v765_v31 = vmax.f32 %v732_v27, 0.0 }
 0x1de   :  { %v669_v58 = vpop.f32.mrf.mxu1 }
 0x1df   :  { %v670_v59 = vadd.f32 %v669_v58, %v591_v43 }
 0x1e2   :  { %v734_v25 = vpop.f32.mrf.mxu2 }
 0x1e3   :  { %v735_v62 = vadd.f32 %v734_v25, %v670_v59 }
 0x1e6   :  { %v672_v35 = vpop.f32.mrf.mxu1 }
 0x1ea   :  { %v737_v32 = vpop.f32.mrf.mxu2 }
 0x1ee   :  { %v675_v0 = vpop.f32.mrf.mxu1 }
 0x1ef   :  { %v676_v30 = vadd.f32 %v675_v0, %v1371_v4  ;;  %v764_v4 = vmax.f32 %v729_v52, 0.0 }
 0x1f2   :  { %v740_v22 = vpop.f32.mrf.mxu2 }
 0x1f3   :  { %v741_v18 = vadd.f32 %v740_v22, %v676_v30 }
 0x1f6   :  { %v678_v1 = vpop.f32.mrf.mxu1 }
 0x1f7   :  { %v679_v34 = vadd.f32 %v678_v1, %v1379_v6  ;;  %v766_v6 = vmax.f32 %v735_v62, 0.0 }
 0x1fa   :  { %v743_v3 = vpop.f32.mrf.mxu2 }
 0x1fb   :  { %v744_v16 = vadd.f32 %v743_v3, %v679_v34 }
 0x1fd   :  { %v769_v21 = vmax.f32 %v744_v16, 0.0 }
 0x1fe   :  { %v681_v49 = vpop.f32.mrf.mxu1 }
 0x1ff   :  { %v682_v39 = vadd.f32 %v681_v49, %v1351_v42  ;;  %v768_v42 = vmax.f32 %v741_v18, 0.0 }
 0x202   :  { %v746_v56 = vpop.f32.mrf.mxu2 }
 0x203   :  { %v747_v13 = vadd.f32 %v746_v56, %v682_v39 }
 0x206   :  { %v684_v51 = vpop.f32.mrf.mxu1 }
 0x207   :  { %v685_v60 = vadd.f32 %v684_v51, %v1359_v19  ;;  %v770_v19 = vmax.f32 %v747_v13, 0.0 }
 0x20a   :  { %v749_v5 = vpop.f32.mrf.mxu2 }
 0x20b   :  { %v750_v2 = vadd.f32 %v749_v5, %v685_v60 }
 0x20e   :  { %v687_v53 = vpop.f32.mrf.mxu1 }
 0x20f   :  { %v688_v7 = vadd.f32 %v687_v53, %v1369_v61  ;;  %v771_v61 = vmax.f32 %v750_v2, 0.0 }
 0x212   :  { %v752_v47 = vpop.f32.mrf.mxu2 }
 0x213   :  { %v753_v9 = vadd.f32 %v752_v47, %v688_v7 }
 0x215   :  { %v772_v14 = vmax.f32 %v753_v9, 0.0 }
 0x216   :  { %v690_v57 = vpop.f32.mrf.mxu1 }
 0x217   :  { %v691_v8 = vadd.f32 %v690_v57, %v1340_v63  ;;  %v673_v63 = vadd.f32 %v672_v35, %v1361_v46  ;;  %v762_v46 = vmax.f32 %v1395_v40, 0.0  ;;  %v779_v40 = vpop.permute.xlu0 %778 }
 0x218   :  { %v781_v26 = vperm.slane %v779_v40, 0 }
 0x219   :  { %v738_v28 = vadd.f32 %v737_v32, %v673_v63 }
 0x21a   :  { %v755_v43 = vpop.f32.mrf.mxu2 }
 0x21b   :  { %v756_v10 = vadd.f32 %v755_v43, %v691_v8  ;;  %v767_v24 = vmax.f32 %v738_v28, 0.0 }
 0x21d   :  { %v773_v12 = vmax.f32 %v756_v10, 0.0 }
 0x21f   :  { %782 = vmatpush.msrb.mxu3 %v773_v12 }
 0x221   :  { %783 = vmatpush.msrb.mxu3 %v772_v14 }
 0x223   :  { %784 = vmatpush.msrb.mxu3 %v771_v61 }
 0x225   :  { %785 = vmatpush.msrb.mxu3 %v770_v19 }
 0x227   :  { %786 = vmatpush.msrb.mxu3 %v769_v21 }
 0x229   :  { %787 = vmatpush.msrb.mxu3 %v768_v42 }
 0x22b   :  { %788 = vmatpush.msrb.mxu3 %v767_v24 }
 0x22d   :  { %789 = vmatpush.msrb.mxu3 %v766_v6 }
 0x22f   :  { %790 = vmatpush.msrb.mxu3 %v765_v31 }
 0x231   :  { %791 = vmatpush.msrb.mxu3 %v764_v4 }
 0x233   :  { %792 = vmatpush.msrb.mxu3 %v763_v36 }
 0x235   :  { %793 = vmatpush.msrb.mxu3 %v762_v46 }
 0x237   :  { %794 = vmatpush.msrb.mxu3 %v761_v38 }
 0x239   :  { %795 = vmatpush.msrb.mxu3 %v760_v20 }
 0x23b   :  { %796 = vmatpush.msrb.mxu3 %v759_v17 }
 0x23d   :  { %797 = vmatpush.msrb.mxu3 %v758_v44 }
 0x23e   :  { %798 = vmatmul.f32.vlgmr.msrb.gmra.mxu3 %v774_v41 }
 0x2c1   :  { %v799_v23 = vpop.f32.mrf.mxu3 }
 0x2c2   :  { %v800_v15 = vadd.f32 %v799_v23, %v781_v26 }
 0x2c4   :  { %803 = vst.msk [vmem:[#allocation3] sm:$0x1] %vm802_vm2, %v800_v15 }
 0x2c5   :  { %814 = dma.vmem_to_hbm [thread:$0]  %s810_s18, 16, %s812_s21, [#allocation4]  }
 0x2c6   :  { %883 = dma.done.wait [#allocation4], 16  }
 0x2c7   :  { %884 = vsyncadd [#allocation4], 4294967280 }
 0x2c8   :  { %819 = vsyncpa [#allocation4], 1 }

</bundles_post_ra>
